<compile_context>
chip_gen: v6e
topology: v6e:2x2x1
jax: 0.10.0
libtpu: 0.0.40
codegen_flags: <defaults>
</compile_context>

<pallas_src>
import math
from functools import partial

import jax
import jax.numpy as jnp
from jax import lax
from jax.experimental import pallas as pl
from jax.experimental.pallas import tpu as pltpu


def _round_up(x, m):
    return (x + m - 1) // m * m


# ---------------------------------------------------------------------------
# Row-tiled linear:  (N, in) @ (in, out) + b  ->  (N, out)
# Weights/bias stay VMEM-resident across the grid; row tiles are pipelined.
# ---------------------------------------------------------------------------
def _linear_kernel(x_ref, w_ref, b_ref, o_ref):
    acc = jnp.dot(x_ref[...], w_ref[...], preferred_element_type=jnp.float32)
    acc = acc + b_ref[...].astype(jnp.float32)
    o_ref[...] = acc.astype(o_ref.dtype)


def linear(x2d, w, b, *, tile_n=256):
    n, d_in = x2d.shape
    d_out = w.shape[1]
    itemsize = x2d.dtype.itemsize

    tile_n = min(tile_n, _round_up(n, 8))
    n_pad = _round_up(n, tile_n)
    if n_pad != n:
        x2d = jnp.pad(x2d, ((0, n_pad - n), (0, 0)))

    b2d = b.reshape(1, d_out)

    # VMEM plan: double-buffered x / out tiles + (conservatively 2x) resident weights.
    vmem_bytes = int(1.25 * (2 * tile_n * (d_in + d_out) * itemsize
                             + 2 * (d_in * d_out + d_out) * itemsize))
    vmem_bytes = min(max(vmem_bytes, 16 << 20), 96 << 20)

    out = pl.pallas_call(
        _linear_kernel,
        out_shape=jax.ShapeDtypeStruct((n_pad, d_out), x2d.dtype),
        grid_spec=pltpu.PrefetchScalarGridSpec(
            num_scalar_prefetch=0,
            grid=(n_pad // tile_n,),
            in_specs=[
                pl.BlockSpec((tile_n, d_in), lambda i: (i, 0)),
                pl.BlockSpec((d_in, d_out), lambda i: (0, 0)),
                pl.BlockSpec((1, d_out), lambda i: (0, 0)),
            ],
            out_specs=pl.BlockSpec((tile_n, d_out), lambda i: (i, 0)),
        ),
        compiler_params=pltpu.CompilerParams(
            dimension_semantics=("parallel",),
            vmem_limit_bytes=vmem_bytes),
    )(x2d, w, b2d)
    return out[:n]


# ---------------------------------------------------------------------------
# Flash-style attention over (batch*heads, seq, dim_head).
# ---------------------------------------------------------------------------
def _attn_kernel(q_ref, k_ref, v_ref, o_ref, m_sc, l_sc, acc_sc, *,
                 scale, seq_len, tile_k):
    ki = pl.program_id(2)

    @pl.when(ki == 0)
    def _():
        m_sc[...] = jnp.full_like(m_sc, -jnp.inf)
        l_sc[...] = jnp.zeros_like(l_sc)
        acc_sc[...] = jnp.zeros_like(acc_sc)

    # (1, TQ, d) x (1, TK, d) -> (1, TQ, TK), f32 MXU accumulation.
    s = jnp.einsum('bqd,bkd->bqk', q_ref[...], k_ref[...],
                   preferred_element_type=jnp.float32) * scale

    # Mask padded kv positions (sequence padded to tile multiple in the wrapper).
    kv_pos = ki * tile_k + lax.broadcasted_iota(jnp.int32, s.shape, 2)
    valid = kv_pos < seq_len
    s = jnp.where(valid, s, -1e30)

    m_prev = m_sc[...]
    m_new = jnp.maximum(m_prev, s.max(axis=-1, keepdims=True))
    alpha = jnp.exp(m_prev - m_new)
    p = jnp.exp(s - m_new)
    p = jnp.where(valid, p, 0.0)

    l_sc[...] = alpha * l_sc[...] + p.sum(axis=-1, keepdims=True)
    acc_sc[...] = alpha * acc_sc[...] + jnp.einsum(
        'bqk,bkd->bqd', p.astype(v_ref.dtype), v_ref[...],
        preferred_element_type=jnp.float32)
    m_sc[...] = m_new

    @pl.when(ki == pl.num_programs(2) - 1)
    def _():
        o_ref[...] = (acc_sc[...] / l_sc[...]).astype(o_ref.dtype)


def masked_attention(x, qkv_w, qkv_b, out_w, out_b, *, heads, dim_head):
    """x: (batch, seq, dim).  qkv_w: (dim, 3*inner), out_w: (inner, dim)
    (weights stored transposed relative to PyTorch's nn.Linear (out, in))."""
    batch, seq, dim = x.shape
    inner = heads * dim_head
    scale = dim_head ** (-0.5)
    n = batch * seq
    x2d = x.reshape(n, dim)

    # to_qkv (MaskedMLP): any pruning mask is assumed pre-multiplied into qkv_w.
    # TODO(synk): MaskedMLP weight mask handled outside the kernel (w * mask).
    qkv = linear(x2d, qkv_w, qkv_b)                       # (n, 3*inner)
    q, k, v = jnp.split(qkv, 3, axis=-1)

    def to_heads(t):                                      # 'b n (h d) -> (b h) n d'
        return (t.reshape(batch, seq, heads, dim_head)
                 .transpose(0, 2, 1, 3)
                 .reshape(batch * heads, seq, dim_head))

    q, k, v = to_heads(q), to_heads(k), to_heads(v)

    # Pad seq so q/kv tiles divide it; the last kv tile always keeps >=1 valid key.
    tile = min(128, _round_up(seq, 8))
    s_pad = _round_up(seq, tile)
    if s_pad != seq:
        pad = ((0, 0), (0, s_pad - seq), (0, 0))
        q, k, v = jnp.pad(q, pad), jnp.pad(k, pad), jnp.pad(v, pad)

    bh = batch * heads
    itemsize = x.dtype.itemsize
    vmem_bytes = int(1.25 * (
        2 * 2 * tile * dim_head * itemsize        # q / out tiles, double-buffered
        + 2 * 2 * tile * dim_head * itemsize      # k / v tiles, double-buffered
        + (2 * tile + tile * dim_head) * 4))      # f32 online-softmax scratch
    vmem_bytes = min(max(vmem_bytes, 16 << 20), 96 << 20)

    attn_out = pl.pallas_call(
        partial(_attn_kernel, scale=scale, seq_len=seq, tile_k=tile),
        out_shape=jax.ShapeDtypeStruct((bh, s_pad, dim_head), x.dtype),
        grid_spec=pltpu.PrefetchScalarGridSpec(
            num_scalar_prefetch=0,
            grid=(bh, s_pad // tile, s_pad // tile),
            in_specs=[
                pl.BlockSpec((1, tile, dim_head), lambda b, qi, ki: (b, qi, 0)),
                pl.BlockSpec((1, tile, dim_head), lambda b, qi, ki: (b, ki, 0)),
                pl.BlockSpec((1, tile, dim_head), lambda b, qi, ki: (b, ki, 0)),
            ],
            out_specs=pl.BlockSpec((1, tile, dim_head),
                                   lambda b, qi, ki: (b, qi, 0)),
            scratch_shapes=[
                pltpu.VMEM((1, tile, 1), jnp.float32),
                pltpu.VMEM((1, tile, 1), jnp.float32),
                pltpu.VMEM((1, tile, dim_head), jnp.float32),
            ],
        ),
        compiler_params=pltpu.CompilerParams(
            dimension_semantics=("parallel", "parallel", "arbitrary"),
            vmem_limit_bytes=vmem_bytes),
    )(q, k, v)

    attn_out = (attn_out[:, :seq, :]
                .reshape(batch, heads, seq, dim_head)
                .transpose(0, 2, 1, 3)
                .reshape(n, inner))                       # '(b h) n d -> b n (h d)' flat

    # to_out: MaskedMLP(inner, dim) then Dropout(0.1).
    # TODO(synk): nn.Dropout(0.1) is identity at inference; no RNG masking emitted.
    out = linear(attn_out, out_w, out_b)
    return out.reshape(batch, seq, dim)


def masked_attention_ref(x, qkv_w, qkv_b, out_w, out_b, *, heads, dim_head):
    """Pure-JAX reference matching the PyTorch module forward."""
    batch, seq, dim = x.shape
    scale = dim_head ** (-0.5)
    qkv = jnp.einsum('bnd,de->bne', x, qkv_w) + qkv_b
    q, k, v = jnp.split(qkv, 3, axis=-1)

    def to_heads(t):
        return t.reshape(batch, seq, heads, dim_head).transpose(0, 2, 1, 3)

    q, k, v = map(to_heads, (q, k, v))
    dots = jnp.einsum('bhqd,bhkd->bhqk', q, k) * scale
    attn = jax.nn.softmax(dots, axis=-1)
    out = jnp.einsum('bhqk,bhkd->bhqd', attn, v)
    out = out.transpose(0, 2, 1, 3).reshape(batch, seq, heads * dim_head)
    return jnp.einsum('bne,ed->bnd', out, out_w) + out_b


if __name__ == "__main__":
    batch, seq, dim = 2, 16, 128
    heads, dim_head = 2, 64
    inner = heads * dim_head  # 128 -> lane-dense 3*inner = 384

    key = jax.random.PRNGKey(0)
    kx, kw1, kb1, kw2, kb2 = jax.random.split(key, 5)

    x = jax.random.normal(kx, (batch, seq, dim), dtype=jnp.float32)

    # nn.Linear-like uniform init, stored transposed (in, out).
    bound1 = 1.0 / math.sqrt(dim)
    qkv_w = jax.random.uniform(kw1, (dim, 3 * inner), jnp.float32, -bound1, bound1)
    qkv_b = jax.random.uniform(kb1, (3 * inner,), jnp.float32, -bound1, bound1)
    bound2 = 1.0 / math.sqrt(inner)
    out_w = jax.random.uniform(kw2, (inner, dim), jnp.float32, -bound2, bound2)
    out_b = jax.random.uniform(kb2, (dim,), jnp.float32, -bound2, bound2)

    out = masked_attention(x, qkv_w, qkv_b, out_w, out_b,
                           heads=heads, dim_head=dim_head)
    out = jax.block_until_ready(out)

    ref = masked_attention_ref(x, qkv_w, qkv_b, out_w, out_b,
                               heads=heads, dim_head=dim_head)
    assert out.shape == (batch, seq, dim)
    assert jnp.allclose(out, ref, atol=1e-4, rtol=1e-4), "mismatch vs reference"

    print("KERNEL_OK")
</pallas_src>

<mosaic_0001>
module attributes {stable_mosaic.version = 11 : i64} {
  func.func @_linear_kernel(%arg0: i32, %arg1: memref<32x128xf32, #tpu.memory_space<vmem>>, %arg2: memref<128x384xf32, #tpu.memory_space<vmem>>, %arg3: memref<1x384xf32, #tpu.memory_space<vmem>>, %arg4: memref<32x384xf32, #tpu.memory_space<vmem>>) attributes {dimension_semantics = [#tpu.dimension_semantics<parallel>], iteration_bounds = array<i64: 1>, scalar_prefetch = 0 : i64, scratch_operands = 0 : i64, tpu.core_type = #tpu.core_type<tc>, window_params = [{transform_indices = @transform_0, window_bounds = array<i64: 32, 128>}, {pipeline_mode = #tpu.pipeline_mode<synchronous>, transform_indices = @transform_1, window_bounds = array<i64: 128, 384>}, {pipeline_mode = #tpu.pipeline_mode<synchronous>, transform_indices = @transform_2, window_bounds = array<i64: 1, 384>}, {transform_indices = @transform_3, window_bounds = array<i64: 32, 384>}]} {
    %c0 = arith.constant 0 : index
    %c0_0 = arith.constant 0 : index
    %0 = vector.load %arg1[%c0, %c0_0] : memref<32x128xf32, #tpu.memory_space<vmem>>, vector<32x128xf32>
    %c0_1 = arith.constant 0 : index
    %c0_2 = arith.constant 0 : index
    %1 = vector.load %arg2[%c0_1, %c0_2] : memref<128x384xf32, #tpu.memory_space<vmem>>, vector<128x384xf32>
    %cst = arith.constant dense<0.000000e+00> : vector<32x384xf32>
    %2 = tpu.matmul %0, %1, %cst {dimension_numbers = #tpu.dot_dimension_numbers<[1], [0], [0], [1], [0, 0, 1, 1], [], []>} : vector<32x128xf32>, vector<128x384xf32>, vector<32x384xf32> -> vector<32x384xf32>
    %c0_3 = arith.constant 0 : index
    %c0_4 = arith.constant 0 : index
    %3 = vector.load %arg3[%c0_3, %c0_4] : memref<1x384xf32, #tpu.memory_space<vmem>>, vector<1x384xf32>
    %4 = vector.broadcast %3 : vector<1x384xf32> to vector<32x384xf32>
    %5 = arith.addf %2, %4 : vector<32x384xf32>
    %c0_5 = arith.constant 0 : index
    %c0_6 = arith.constant 0 : index
    %6 = vector.load %arg4[%c0_5, %c0_6] : memref<32x384xf32, #tpu.memory_space<vmem>>, vector<32x384xf32>
    tpu.vector_store %arg4[%c0_5, %c0_6], %5 {strides = array<i32>} : memref<32x384xf32, #tpu.memory_space<vmem>>, vector<32x384xf32>,
    return
  }
  func.func @transform_0(%arg0: i32) -> (i32, i32) {
    %c0_i32 = arith.constant 0 : i32
    %c0_i32_0 = arith.constant 0 : i32
    return %arg0, %c0_i32 : i32, i32
  }
  func.func @transform_1(%arg0: i32) -> (i32, i32) {
    %c0_i32 = arith.constant 0 : i32
    %c0_i32_0 = arith.constant 0 : i32
    %c0_i32_1 = arith.constant 0 : i32
    return %c0_i32, %c0_i32_0 : i32, i32
  }
  func.func @transform_2(%arg0: i32) -> (i32, i32) {
    %c0_i32 = arith.constant 0 : i32
    %c0_i32_0 = arith.constant 0 : i32
    %c0_i32_1 = arith.constant 0 : i32
    return %c0_i32, %c0_i32_0 : i32, i32
  }
  func.func @transform_3(%arg0: i32) -> (i32, i32) {
    %c0_i32 = arith.constant 0 : i32
    %c0_i32_0 = arith.constant 0 : i32
    return %arg0, %c0_i32 : i32, i32
  }
}

</mosaic_0001>

<bundles_post_ra>
// kernel: tpu_custom_call.1
= control target key start
LH: loop header
LB: loop body
LE: loop exit
PB: predicated region body
PF: predicated region fallthrough
CT: control target
= control target key end

     0   :  { %8 = vsyncpa [#allocation3], 0  ;;  %s498_s0 = inlined_call_operand.hbm [shape: f32[32,128], index: 0, kind: input, shape index: {}]   ;;  %s499_s1 = inlined_call_operand.hbm [shape: f32[128,384], index: 1, kind: input, shape index: {}]   ;;  %s500_s2 = inlined_call_operand.vmem [shape: f32[1,384], index: 2, kind: input, shape index: {}]   ;;  %s501_s3 = inlined_call_operand.hbm [shape: f32[32,384], index: 3, kind: output, shape index: {}]  }
   0x1   :  { %9 = vsyncpa [#allocation6], 0 }
   0x2   :  { %10 = vsyncpa [#allocation4], 0  ;;  %s448_s12 = smov [#allocation2]  }
   0x3   :  { %s16_s13 = sshll.u32 %s448_s12, 4  ;;  %s17_s13 = int_to_ptr.vmem [resolvable:$true] %s16_s13 }
   0x4   :  { %s390_s14 = scalar_lea.vmem %s17_s13, 512  ;;  %p395_p1 = scmp.lt.s32.totalorder %s17_s13, %s17_s13 }
   0x5   :  { %p391_p0 = scmp.ne.s32.totalorder %s17_s13, %s390_s14  ;;  %p396_p2 = scmp.lt.s32.totalorder %s390_s14, %s390_s14 }
   0x7   :  { %p397_p3 = por %p396_p2, %p395_p1 }
   0x9   :  { %p398_p4 = pnand %p397_p3, %p391_p0 }
   0xb   :  { %401 = shalt.err (!%p398_p4)
}
   0xc   :  { %s449_s15 = smov 128   ;;  %s450_s16 = smov 8  }
   0xd   :  { %22 = dma.hbm_to_vmem [thread:$0]  %s498_s0, 512, %s17_s13, [#allocation3], %s449_s15, %s449_s15, %s450_s16  }
   0xe   :  { %s451_s19 = smov [#allocation5]  }
   0xf   :  { %s28_s20 = sshll.u32 %s451_s19, 4  ;;  %s29_s20 = int_to_ptr.vmem [resolvable:$true] %s28_s20 }
  0x10   :  { %s410_s21 = scalar_lea.vmem %s29_s20, 6144  ;;  %p415_p6 = scmp.lt.s32.totalorder %s29_s20, %s29_s20 }
  0x11   :  { %p411_p5 = scmp.ne.s32.totalorder %s29_s20, %s410_s21  ;;  %p416_p7 = scmp.lt.s32.totalorder %s410_s21, %s410_s21 }
  0x13   :  { %p417_p8 = por %p416_p7, %p415_p6 }
  0x15   :  { %p418_p9 = pnand %p417_p8, %p411_p5 }
  0x17   :  { %421 = shalt.err (!%p418_p9)
}
  0x18   :  { %s452_s22 = smov 384   ;;  %s453_s23 = smov 24  }
  0x19   :  { %34 = dma.hbm_to_vmem [thread:$0]  %s499_s1, 6144, %s29_s20, [#allocation6], %s452_s22, %s452_s22, %s453_s23  }
  0x1a   :  { %442 = dma.done.wait [#allocation3], 512  }
  0x1b   :  { %443 = vsyncadd [#allocation3], 4294966784 }
  0x1c   :  { %444 = dma.done.wait [#allocation6], 6144  }
  0x1d   :  { %445 = vsyncadd [#allocation6], 4294961152  ;;  %v454_v0 = vmov 0.0   ;;  %v93_v1 = vld [vmem:[#allocation5 + $0x170] sm:$0xff]  ;;  %v92_v2 = vld [vmem:[#allocation5 + $0x168] sm:$0xff]  ;;  %v97_v53 = vlaneseq }
  0x1e   :  { %176 = vmatprep.mubr.f32.mxu0 %v454_v0  ;;  %v90_v3 = vld [vmem:[#allocation5 + $0x158] sm:$0xff]  ;;  %112 = vmatprep.subr.mxu0 %v93_v1  ;;  %v89_v4 = vld [vmem:[#allocation5 + $0x150] sm:$0xff]  ;;  %v87_v5 = vld [vmem:[#allocation5 + $0x140] sm:$0xff] }
  0x1f   :  { %113 = vmatpush1.msra.mxu0 %v92_v2  ;;  %v94_v6 = vld [vmem:[#allocation5 + $0x178] sm:$0xff]  ;;  %v91_v8 = vld [vmem:[#allocation5 + $0x160] sm:$0xff]  ;;  %v84_v9 = vld [vmem:[#allocation5 + $0x128] sm:$0xff]  ;;  %v98_v54 = vshrl.u32 %v97_v53, 7 }
  0x20   :  { %114 = vmatprep.subr.mxu0 %v90_v3  ;;  %v86_v7 = vld [vmem:[#allocation5 + $0x138] sm:$0xff]  ;;  %336 = vmatprep.subr.mxu1 %v94_v6  ;;  %v88_v10 = vld [vmem:[#allocation5 + $0x148] sm:$0xff]  ;;  %v83_v11 = vld [vmem:[#allocation5 + $0x120] sm:$0xff] }
  0x21   :  { %115 = vmatpush1.msra.mxu0 %v89_v4  ;;  %337 = vmatpush3.msra.mxu1 %v94_v6  ;;  %v81_v12 = vld [vmem:[#allocation5 + $0x110] sm:$0xff]  ;;  %v80_v14 = vld [vmem:[#allocation5 + $0x108] sm:$0xff]  ;;  %v78_v15 = vld [vmem:[#allocation5 + $0xf8] sm:$0xff]  ;;  %v99_v55 = vsub.s32 0, %v98_v54  ;;  %v103_v57 = vsub.s32 1, %v98_v54  ;;  %v107_v58 = vsub.s32 2, %v98_v54 }
  0x22   :  { %116 = vmatprep.subr.mxu0 %v87_v5  ;;  %338 = vmatprep.subr.mxu1 %v91_v8  ;;  %v85_v13 = vld [vmem:[#allocation5 + $0x130] sm:$0xff]  ;;  %v82_v16 = vld [vmem:[#allocation5 + $0x118] sm:$0xff]  ;;  %v75_v18 = vld [vmem:[#allocation5 + $0xe0] sm:$0xff] }
  0x23   :  { %117 = vmatpush1.msra.mxu0 %v86_v7  ;;  %339 = vmatpush3.msra.mxu1 %v91_v8  ;;  %v77_v17 = vld [vmem:[#allocation5 + $0xf0] sm:$0xff]  ;;  %v79_v19 = vld [vmem:[#allocation5 + $0x100] sm:$0xff]  ;;  %v74_v20 = vld [vmem:[#allocation5 + $0xd8] sm:$0xff] }
  0x24   :  { %118 = vmatprep.subr.mxu0 %v84_v9  ;;  %340 = vmatprep.subr.mxu1 %v88_v10  ;;  %v72_v21 = vld [vmem:[#allocation5 + $0xc8] sm:$0xff]  ;;  %v71_v23 = vld [vmem:[#allocation5 + $0xc0] sm:$0xff]  ;;  %v69_v24 = vld [vmem:[#allocation5 + $0xb0] sm:$0xff] }
  0x25   :  { %119 = vmatpush1.msra.mxu0 %v83_v11  ;;  %341 = vmatpush3.msra.mxu1 %v88_v10  ;;  %v76_v22 = vld [vmem:[#allocation5 + $0xe8] sm:$0xff]  ;;  %v73_v25 = vld [vmem:[#allocation5 + $0xd0] sm:$0xff]  ;;  %v66_v27 = vld [vmem:[#allocation5 + $0x98] sm:$0xff] }
  0x26   :  { %120 = vmatprep.subr.mxu0 %v81_v12  ;;  %342 = vmatprep.subr.mxu1 %v85_v13  ;;  %v68_v26 = vld [vmem:[#allocation5 + $0xa8] sm:$0xff]  ;;  %v70_v28 = vld [vmem:[#allocation5 + $0xb8] sm:$0xff]  ;;  %v65_v29 = vld [vmem:[#allocation5 + $0x90] sm:$0xff] }
  0x27   :  { %121 = vmatpush1.msra.mxu0 %v80_v14  ;;  %343 = vmatpush3.msra.mxu1 %v85_v13  ;;  %v63_v30 = vld [vmem:[#allocation5 + $0x80] sm:$0xff]  ;;  %v62_v32 = vld [vmem:[#allocation5 + $0x78] sm:$0xff]  ;;  %v60_v33 = vld [vmem:[#allocation5 + $0x68] sm:$0xff] }
  0x28   :  { %122 = vmatprep.subr.mxu0 %v78_v15  ;;  %344 = vmatprep.subr.mxu1 %v82_v16  ;;  %v67_v31 = vld [vmem:[#allocation5 + $0xa0] sm:$0xff]  ;;  %v64_v34 = vld [vmem:[#allocation5 + $0x88] sm:$0xff]  ;;  %v57_v36 = vld [vmem:[#allocation5 + $0x50] sm:$0xff] }
  0x29   :  { %123 = vmatpush1.msra.mxu0 %v77_v17  ;;  %345 = vmatpush3.msra.mxu1 %v82_v16  ;;  %v59_v35 = vld [vmem:[#allocation5 + $0x60] sm:$0xff]  ;;  %v61_v37 = vld [vmem:[#allocation5 + $0x70] sm:$0xff]  ;;  %v56_v38 = vld [vmem:[#allocation5 + $0x48] sm:$0xff] }
  0x2a   :  { %124 = vmatprep.subr.mxu0 %v75_v18  ;;  %346 = vmatprep.subr.mxu1 %v79_v19  ;;  %v54_v39 = vld [vmem:[#allocation5 + $0x38] sm:$0xff]  ;;  %v53_v41 = vld [vmem:[#allocation5 + $0x30] sm:$0xff]  ;;  %v51_v42 = vld [vmem:[#allocation5 + $0x20] sm:$0xff] }
  0x2b   :  { %125 = vmatpush1.msra.mxu0 %v74_v20  ;;  %347 = vmatpush3.msra.mxu1 %v79_v19  ;;  %v58_v40 = vld [vmem:[#allocation5 + $0x58] sm:$0xff]  ;;  %v55_v43 = vld [vmem:[#allocation5 + $0x40] sm:$0xff]  ;;  %v48_v45 = vld [vmem:[#allocation5 + $0x8] sm:$0xff] }
  0x2c   :  { %126 = vmatprep.subr.mxu0 %v72_v21  ;;  %348 = vmatprep.subr.mxu1 %v76_v22  ;;  %v50_v44 = vld [vmem:[#allocation5 + $0x18] sm:$0xff]  ;;  %v52_v46 = vld [vmem:[#allocation5 + $0x28] sm:$0xff]  ;;  %v47_v47 = vld [vmem:[#allocation5] sm:$0xff] }
  0x2d   :  { %127 = vmatpush1.msra.mxu0 %v71_v23  ;;  %349 = vmatpush3.msra.mxu1 %v76_v22  ;;  %v43_v48 = vld [vmem:[#allocation2] sm:$0xff]  ;;  %v49_v49 = vld [vmem:[#allocation5 + $0x10] sm:$0xff]  ;;  %v44_v50 = vld [vmem:[#allocation2 + $0x8] sm:$0xff] }
  0x2e   :  { %128 = vmatprep.subr.mxu0 %v69_v24  ;;  %350 = vmatprep.subr.mxu1 %v73_v25  ;;  %v45_v51 = vld [vmem:[#allocation2 + $0x10] sm:$0xff]  ;;  %v46_v52 = vld [vmem:[#allocation2 + $0x18] sm:$0xff]  ;;  %v95_v56 = vld [vmem:[%s500_s2] sm:$0x7]  ;;  %s455_s2 = smov [#allocation7]  }
  0x2f   :  { %129 = vmatpush1.msra.mxu0 %v68_v26  ;;  %351 = vmatpush3.msra.mxu1 %v73_v25  ;;  %v100_v59 = vrot.slane %v95_v56, %v99_v55  ;;  %v104_v60 = vrot.slane %v95_v56, %v103_v57  ;;  %v108_v62 = vrot.slane %v95_v56, %v107_v58  ;;  %s303_s26 = sshll.u32 %s455_s2, 4  ;;  %s304_s26 = int_to_ptr.vmem [resolvable:$true] %s303_s26 }
  0x30   :  { %130 = vmatprep.subr.mxu0 %v66_v27  ;;  %352 = vmatprep.subr.mxu1 %v70_v28  ;;  %s422_s27 = scalar_lea.vmem %s304_s26, 1536  ;;  %p427_p11 = scmp.lt.s32.totalorder %s304_s26, %s304_s26 }
  0x31   :  { %131 = vmatpush1.msra.mxu0 %v65_v29  ;;  %353 = vmatpush3.msra.mxu1 %v70_v28  ;;  %p423_p10 = scmp.ne.s32.totalorder %s304_s26, %s422_s27  ;;  %p428_p12 = scmp.lt.s32.totalorder %s422_s27, %s422_s27 }
  0x32   :  { %132 = vmatprep.subr.mxu0 %v63_v30  ;;  %354 = vmatprep.subr.mxu1 %v67_v31 }
  0x33   :  { %133 = vmatpush1.msra.mxu0 %v62_v32  ;;  %355 = vmatpush3.msra.mxu1 %v67_v31  ;;  %p429_p13 = por %p428_p12, %p427_p11 }
  0x34   :  { %134 = vmatprep.subr.mxu0 %v60_v33  ;;  %356 = vmatprep.subr.mxu1 %v64_v34 }
  0x35   :  { %135 = vmatpush1.msra.mxu0 %v59_v35  ;;  %357 = vmatpush3.msra.mxu1 %v64_v34  ;;  %p430_p0 = pnand %p429_p13, %p423_p10 }
  0x36   :  { %136 = vmatprep.subr.mxu0 %v57_v36  ;;  %358 = vmatprep.subr.mxu1 %v61_v37 }
  0x37   :  { %137 = vmatpush1.msra.mxu0 %v56_v38  ;;  %359 = vmatpush3.msra.mxu1 %v61_v37 }
  0x38   :  { %138 = vmatprep.subr.mxu0 %v54_v39  ;;  %360 = vmatprep.subr.mxu1 %v58_v40 }
  0x39   :  { %139 = vmatpush1.msra.mxu0 %v53_v41  ;;  %361 = vmatpush3.msra.mxu1 %v58_v40 }
  0x3a   :  { %140 = vmatprep.subr.mxu0 %v51_v42  ;;  %362 = vmatprep.subr.mxu1 %v55_v43 }
  0x3b   :  { %141 = vmatpush1.msra.mxu0 %v50_v44  ;;  %363 = vmatpush3.msra.mxu1 %v55_v43 }
  0x3c   :  { %142 = vmatprep.subr.mxu0 %v48_v45  ;;  %364 = vmatprep.subr.mxu1 %v52_v46 }
  0x3d   :  { %143 = vmatpush1.msra.mxu0 %v47_v47  ;;  %365 = vmatpush3.msra.mxu1 %v52_v46 }
  0x3e   :  { %177 = vmatmul.mubr.f32.vlgmr.msra.gmra.mxu0 %v43_v48  ;;  %366 = vmatprep.subr.mxu1 %v49_v49 }
  0x3f   :  { %182 = vmatprep.mubr.f32.mxu0 %v454_v0  ;;  %367 = vmatpush3.msra.mxu1 %v49_v49 }
  0x40   :  { %368 = vmatprep.mubr.f32.mxu1 %v43_v48 }
  0x41   :  { %369 = vmatmul.mubr.f32.vlgmr.msra.gmra.mxu1 %v44_v50 }
  0x42   :  { %183 = vmatmul.mubr.f32.gmra.mxu0 %v44_v50  ;;  %371 = vmatprep.mubr.f32.mxu1 %v45_v51 }
  0x43   :  { %188 = vmatprep.mubr.f32.mxu0 %v454_v0 }
  0x45   :  { %372 = vmatmul.mubr.f32.gmra.mxu1 %v46_v52 }
  0x46   :  { %189 = vmatmul.mubr.f32.gmra.mxu0 %v45_v51 }
  0x47   :  { %194 = vmatprep.mubr.f32.mxu0 %v454_v0 }
  0x4a   :  { %195 = vmatmul.mubr.f32.gmra.mxu0 %v46_v52 }
  0xfe   :  { %v178_v61 = vpop.f32.mrf.mxu0 }
  0xff   :  { %v179_v63 = vadd.f32 %v178_v61, %v100_v59 }
 0x100   :  { %v180_v1 = vpop.f32.mrf.mxu0 }
 0x101   :  { %286 = vst [vmem:[#allocation7] sm:$0xff] %v179_v63  ;;  %v181_v2 = vadd.f32 %v180_v1, %v104_v60  ;;  %v370_v3 = vpop.f32.mrf.mxu1 }
 0x102   :  { %v184_v0 = vpop.f32.mrf.mxu0  ;;  %v273_v4 = vadd.f32 %v370_v3, %v108_v62 }
 0x103   :  { %287 = vst [vmem:[#allocation7 + $0x8] sm:$0xff] %v181_v2  ;;  %v185_v5 = vadd.f32 %v184_v0, %v100_v59  ;;  %v267_v6 = vpop.f32.mrf.mxu1 }
 0x104   :  { %v186_v7 = vpop.f32.mrf.mxu0  ;;  %291 = vst [vmem:[#allocation7 + $0x28] sm:$0xff] %v273_v4  ;;  %v268_v8 = vadd.f32 %v267_v6, %v108_v62 }
 0x105   :  { %289 = vst [vmem:[#allocation7 + $0x18] sm:$0xff] %v185_v5  ;;  %v187_v9 = vadd.f32 %v186_v7, %v104_v60  ;;  %v373_v10 = vpop.f32.mrf.mxu1 }
 0x106   :  { %v190_v11 = vpop.f32.mrf.mxu0  ;;  %288 = vst [vmem:[#allocation7 + $0x10] sm:$0xff] %v268_v8  ;;  %v283_v12 = vadd.f32 %v373_v10, %v108_v62 }
 0x107   :  { %290 = vst [vmem:[#allocation7 + $0x20] sm:$0xff] %v187_v9  ;;  %v191_v13 = vadd.f32 %v190_v11, %v100_v59  ;;  %v277_v14 = vpop.f32.mrf.mxu1 }
 0x108   :  { %v192_v15 = vpop.f32.mrf.mxu0  ;;  %297 = vst [vmem:[#allocation7 + $0x58] sm:$0xff] %v283_v12  ;;  %v278_v16 = vadd.f32 %v277_v14, %v108_v62 }
 0x109   :  { %292 = vst [vmem:[#allocation7 + $0x30] sm:$0xff] %v191_v13  ;;  %v193_v17 = vadd.f32 %v192_v15, %v104_v60 }
 0x10a   :  { %v196_v18 = vpop.f32.mrf.mxu0  ;;  %294 = vst [vmem:[#allocation7 + $0x40] sm:$0xff] %v278_v16 }
 0x10b   :  { %293 = vst [vmem:[#allocation7 + $0x38] sm:$0xff] %v193_v17  ;;  %v197_v19 = vadd.f32 %v196_v18, %v100_v59 }
 0x10c   :  { %v198_v20 = vpop.f32.mrf.mxu0 }
 0x10d   :  { %295 = vst [vmem:[#allocation7 + $0x48] sm:$0xff] %v197_v19  ;;  %v199_v21 = vadd.f32 %v198_v20, %v104_v60 }
 0x10f   :  { %296 = vst [vmem:[#allocation7 + $0x50] sm:$0xff] %v199_v21 }
 0x110   :  { %433 = shalt.err (!%p430_p0)
}
 0x111   :  { %309 = dma.vmem_to_hbm [thread:$0]  %s304_s26, 1536, %s501_s3, [#allocation4], %s452_s22, %s452_s22, %s453_s23  }
 0x112   :  { %446 = dma.done.wait [#allocation4], 1536  }
 0x113   :  { %447 = vsyncadd [#allocation4], 4294965760 }
 0x114   :  { %313 = vsyncpa [#allocation3], 1 }
 0x115   :  { %314 = vsyncpa [#allocation6], 1 }
 0x116   :  { %315 = vsyncpa [#allocation4], 1 }

</bundles_post_ra>
